<compile_context>
chip_gen: v5e
topology: v5e:2x2
jax: 0.10.0
libtpu: 0.0.40
codegen_flags: <defaults>
</compile_context>

<pallas_src>
import functools
import math

import jax
import jax.numpy as jnp
from jax.experimental import pallas as pl
from jax.experimental.pallas import tpu as pltpu


def _flash_self_attn_kernel(xq_ref, xkv_ref, wq_ref, bq_ref, wk_ref, bk_ref,
                            wv_ref, bv_ref, o_ref,
                            q_scr, k_scr, v_scr, m_scr, l_scr, acc_scr,
                            *, compute_dtype, cache_kv):
    """One (batch-tile, q-tile, kv-tile) grid step of fused self-attention.

    xq_ref : (Bt, Tq, D)   rows used for the Q projection (fixed across kv axis)
    xkv_ref: (Bt, Tk, D)   rows used for the K/V projection (only read at qi==0
                           when the VMEM K/V cache is active)
    wq_ref : (D, D)  bq_ref: (1, D)   -- scale 1/sqrt(D) pre-folded on host
    wk_ref : (D, D)  bk_ref: (1, D)
    wv_ref : (D, D)  bv_ref: (1, D)
    o_ref  : (Bt, Tq, D)
    scratch: q (compute dtype), k/v cache (compute dtype, length S if cached
             else Tk), m/l/acc (f32) -> online softmax over the kv axis.
    """
    qi = pl.program_id(1)
    ki = pl.program_id(2)
    bt, tq, d = q_scr.shape
    tk = xkv_ref.shape[1]

    @pl.when(ki == 0)
    def _init():
        # Q projection once per (batch-tile, q-tile); 1/sqrt(D) is already in
        # wq/bq so no extra broadcast-multiply here.
        xq = xq_ref[...].reshape(bt * tq, d).astype(compute_dtype)
        q = jnp.dot(xq, wq_ref[...], preferred_element_type=jnp.float32)
        q = q + bq_ref[...]
        q_scr[...] = q.reshape(bt, tq, d).astype(compute_dtype)
        m_scr[...] = jnp.full_like(m_scr, -jnp.inf)
        l_scr[...] = jnp.zeros_like(l_scr)
        acc_scr[...] = jnp.zeros_like(acc_scr)

    def _project_kv():
        # Separate K and V matmuls (no (D, 2D) fusion): avoids a non-lane-
        # aligned slice when D % 128 != 0; total MXU work is identical.
        xkv = xkv_ref[...].reshape(bt * tk, d).astype(compute_dtype)
        k = jnp.dot(xkv, wk_ref[...], preferred_element_type=jnp.float32)
        v = jnp.dot(xkv, wv_ref[...], preferred_element_type=jnp.float32)
        k = (k + bk_ref[...]).reshape(bt, tk, d).astype(compute_dtype)
        v = (v + bv_ref[...]).reshape(bt, tk, d).astype(compute_dtype)
        start = pl.multiple_of(ki * tk, tk) if cache_kv else 0
        k_scr[:, pl.ds(start, tk), :] = k
        v_scr[:, pl.ds(start, tk), :] = v

    if cache_kv:
        # Project K/V only on the first q tile of each batch tile; later q
        # tiles reuse the VMEM cache (no re-projection, no bias/cast redo).
        pl.when(qi == 0)(_project_kv)
        start = pl.multiple_of(ki * tk, tk)
    else:
        _project_kv()
        start = 0

    k = k_scr[:, pl.ds(start, tk), :]
    v = v_scr[:, pl.ds(start, tk), :]

    # scores = Q K^T: contract the last dims directly (no transpose / XLU copy).
    s = jax.lax.dot_general(
        q_scr[...], k,
        dimension_numbers=(((2,), (2,)), ((0,), (0,))),
        preferred_element_type=jnp.float32)                   # (Bt, Tq, Tk)

    # Online (flash) softmax update in f32 scratch — never materializes (S, S).
    m_prev = m_scr[...]
    m_new = jnp.maximum(m_prev, s.max(axis=-1, keepdims=True))
    alpha = jnp.exp(m_prev - m_new)
    p = jnp.exp(s - m_new)
    l_scr[...] = alpha * l_scr[...] + p.sum(axis=-1, keepdims=True)
    pv = jax.lax.dot_general(
        p.astype(compute_dtype), v,
        dimension_numbers=(((2,), (1,)), ((0,), (0,))),
        preferred_element_type=jnp.float32)                   # (Bt, Tq, D)
    acc_scr[...] = alpha * acc_scr[...] + pv
    m_scr[...] = m_new

    @pl.when(ki == pl.num_programs(2) - 1)
    def _finalize():
        inv_l = pl.reciprocal(l_scr[...], approx=True)        # EUP vrcp, frees VALU
        # For D < 128 this store is lane-masked, but it runs once per
        # (batch-tile, q-tile) group, amortized over the kv loop.
        o_ref[...] = (acc_scr[...] * inv_l).astype(o_ref.dtype)


def _pick_seq_tile(s, target):
    """Largest tile <= target dividing s, preferring multiples of 16 (bf16
    sublane packing), then 8; falls back to the full extent."""
    if s <= target:
        return s
    for align in (16, 8):
        for t in range(target, align - 1, -1):
            if s % t == 0 and t % align == 0:
                return t
    return s


def _pick_batch_tile(b, tq, row_target=512):
    """Pack batch elements until the projection M-dim reaches ~row_target rows
    (keeps 256x256 MXUs fed for small S), but keep >= 2 batch tiles when
    possible so v7x's second TensorCore has parallel work."""
    best = 1
    for bt in range(1, b + 1):
        if b % bt != 0:
            continue
        if bt * tq > max(row_target, tq):
            continue
        if b >= 2 and b // bt < 2:
            continue
        best = bt
    return best


def self_attention(x, wq, bq, wk, bk, wv, bv, *, tq=256, tk=512,
                   compute_dtype=jnp.bfloat16):
    """x: (B, S, D); w*: (D, D) stored (in, out); b*: (D,). Returns (B, S, D).

    Note: on v5e a smaller q tile (tq=128) with tk=256-512 relieves the single
    vector-store slot; pass it via the kwargs.
    """
    B, S, D = x.shape
    scale = D ** -0.5

    tq = _pick_seq_tile(S, tq)
    tk = _pick_seq_tile(S, tk)
    bt = _pick_batch_tile(B, tq)

    # Fold the 1/sqrt(D) score scale into the Q projection on the host (free).
    wq_c = (wq * scale).astype(compute_dtype)
    wk_c = wk.astype(compute_dtype)
    wv_c = wv.astype(compute_dtype)
    bq2 = (bq * scale).reshape(1, D).astype(jnp.float32)
    bk2 = bk.reshape(1, D).astype(jnp.float32)
    bv2 = bv.reshape(1, D).astype(jnp.float32)

    csize = jnp.dtype(compute_dtype).itemsize
    xsize = x.dtype.itemsize

    # Physical VMEM per core with ~25% headroom for Mosaic-internal scratch
    # (96 MiB on v5e/v6e, 48 MiB on v7x); fallback for non-TPU tracing.
    try:
        vmem_cap = int(pltpu.get_tpu_info().vmem_capacity_bytes)
    except Exception:
        vmem_cap = 128 * 1024 * 1024

    # Cache projected K/V for the whole batch tile in VMEM when it fits: the
    # K/V projection (and the matching x HBM reads) then run once per batch
    # tile instead of once per q tile (~(S/tq - 1)/(S/tq) of that work removed).
    kv_cache_bytes = 2 * bt * S * D * csize
    cache_kv = (S // tq > 1) and kv_cache_bytes <= int(0.3 * vmem_cap)
    s_cache = S if cache_kv else tk

    need = (2 * bt * tq * D * xsize          # xq blocks (double-buffered)
            + 2 * bt * tk * D * xsize        # xkv blocks (double-buffered)
            + 2 * bt * tq * D * xsize        # output blocks (double-buffered)
            + 2 * 3 * D * D * csize          # wq/wk/wv (double-buffered)
            + 2 * 3 * D * 4                  # biases (f32)
            + bt * tq * D * csize            # projected-Q scratch
            + 2 * bt * s_cache * D * csize   # K/V scratch (full cache or 1 tile)
            + 2 * bt * tq * 4                # m, l
            + bt * tq * D * 4                # f32 accumulator
            + 3 * bt * tq * tk * 4)          # compiler-materialized s/p/exp tiles
    vmem_limit = int(min(max(int(1.5 * need), 16 * 1024 * 1024),
                         int(0.75 * vmem_cap)))

    grid = (B // bt, S // tq, S // tk)

    if cache_kv:
        # x's K/V rows are only consumed while qi == 0; afterwards pin the block
        # index so Pallas stops re-fetching them from HBM.
        xkv_map = lambda b, qi, ki: (b, jnp.where(qi == 0, ki, 0), 0)
        # q axis must be sequential on a core so the cache written at qi == 0
        # is visible to later q tiles; batch stays parallel for megacore.
        dims = ("parallel", "arbitrary", "arbitrary")
    else:
        xkv_map = lambda b, qi, ki: (b, ki, 0)
        dims = ("parallel", "parallel", "arbitrary")

    kernel = functools.partial(_flash_self_attn_kernel,
                               compute_dtype=compute_dtype, cache_kv=cache_kv)

    return pl.pallas_call(
        kernel,
        out_shape=jax.ShapeDtypeStruct((B, S, D), x.dtype),
        grid_spec=pltpu.PrefetchScalarGridSpec(
            num_scalar_prefetch=0,
            grid=grid,
            in_specs=[
                pl.BlockSpec((bt, tq, D), lambda b, qi, ki: (b, qi, 0)),  # x (Q rows)
                pl.BlockSpec((bt, tk, D), xkv_map),                       # x (K/V rows)
                pl.BlockSpec((D, D), lambda b, qi, ki: (0, 0)),           # wq (scaled)
                pl.BlockSpec((1, D), lambda b, qi, ki: (0, 0)),           # bq (scaled)
                pl.BlockSpec((D, D), lambda b, qi, ki: (0, 0)),           # wk
                pl.BlockSpec((1, D), lambda b, qi, ki: (0, 0)),           # bk
                pl.BlockSpec((D, D), lambda b, qi, ki: (0, 0)),           # wv
                pl.BlockSpec((1, D), lambda b, qi, ki: (0, 0)),           # bv
            ],
            out_specs=pl.BlockSpec((bt, tq, D), lambda b, qi, ki: (b, qi, 0)),
            scratch_shapes=[
                pltpu.VMEM((bt, tq, D), compute_dtype),       # projected Q
                pltpu.VMEM((bt, s_cache, D), compute_dtype),  # projected K (cache)
                pltpu.VMEM((bt, s_cache, D), compute_dtype),  # projected V (cache)
                pltpu.VMEM((bt, tq, 1), jnp.float32),         # running max m
                pltpu.VMEM((bt, tq, 1), jnp.float32),         # running denom l
                pltpu.VMEM((bt, tq, D), jnp.float32),         # f32 accumulator
            ]),
        compiler_params=pltpu.CompilerParams(
            dimension_semantics=dims,
            vmem_limit_bytes=vmem_limit),
    )(x, x, wq_c, bq2, wk_c, bk2, wv_c, bv2)


def _reference(x, wq, bq, wk, bk, wv, bv):
    D = x.shape[-1]
    q = x @ wq + bq
    k = x @ wk + bk
    v = x @ wv + bv
    s = jnp.einsum('bqd,bkd->bqk', q, k) / (D ** 0.5)
    a = jax.nn.softmax(s, axis=2)
    return jnp.einsum('bqk,bkd->bqd', a, v)


if __name__ == "__main__":
    B, S, D = 2, 8, 32
    key = jax.random.PRNGKey(0)
    kx, kq, kbq, kk, kbk, kv, kbv = jax.random.split(key, 7)

    x = jax.random.normal(kx, (B, S, D), dtype=jnp.float32)
    # deterministic parameter init (stand-in for nn.Linear's uniform init)
    lim = 1.0 / math.sqrt(D)
    wq = jax.random.uniform(kq, (D, D), jnp.float32, -lim, lim)
    bq = jax.random.uniform(kbq, (D,), jnp.float32, -lim, lim)
    wk = jax.random.uniform(kk, (D, D), jnp.float32, -lim, lim)
    bk = jax.random.uniform(kbk, (D,), jnp.float32, -lim, lim)
    wv = jax.random.uniform(kv, (D, D), jnp.float32, -lim, lim)
    bv = jax.random.uniform(kbv, (D,), jnp.float32, -lim, lim)

    out = jax.block_until_ready(self_attention(x, wq, bq, wk, bk, wv, bv))
    ref = _reference(x, wq, bq, wk, bk, wv, bv)
    assert out.shape == (B, S, D)
    # bf16 MXU inputs + approx reciprocal -> loosened tolerance vs f32 reference.
    assert jnp.allclose(out, ref, atol=3e-2, rtol=3e-2)

    # Multi-tile flash path: several q and kv tiles, exercising the VMEM K/V
    # cache (projection once per batch tile) and the pinned xkv index map.
    S2 = 256
    x2 = jax.random.normal(jax.random.PRNGKey(1), (B, S2, D), dtype=jnp.float32)
    out2 = jax.block_until_ready(
        self_attention(x2, wq, bq, wk, bk, wv, bv, tq=64, tk=64))
    ref2 = _reference(x2, wq, bq, wk, bk, wv, bv)
    assert jnp.allclose(out2, ref2, atol=3e-2, rtol=3e-2)

    print("KERNEL_OK")
</pallas_src>

<mosaic_0001>
module attributes {stable_mosaic.version = 11 : i64} {
  func.func @_flash_self_attn_kernel(%arg0: i32, %arg1: i32, %arg2: i32, %arg3: memref<1x8x32xf32, #tpu.memory_space<vmem>>, %arg4: memref<1x8x32xf32, #tpu.memory_space<vmem>>, %arg5: memref<32x32xbf16, #tpu.memory_space<vmem>>, %arg6: memref<1x32xf32, #tpu.memory_space<vmem>>, %arg7: memref<32x32xbf16, #tpu.memory_space<vmem>>, %arg8: memref<1x32xf32, #tpu.memory_space<vmem>>, %arg9: memref<32x32xbf16, #tpu.memory_space<vmem>>, %arg10: memref<1x32xf32, #tpu.memory_space<vmem>>, %arg11: memref<1x8x32xf32, #tpu.memory_space<vmem>>, %arg12: memref<1x8x32xbf16, #tpu.memory_space<vmem>>, %arg13: memref<1x8x32xbf16, #tpu.memory_space<vmem>>, %arg14: memref<1x8x32xbf16, #tpu.memory_space<vmem>>, %arg15: memref<1x8x1xf32, #tpu.memory_space<vmem>>, %arg16: memref<1x8x1xf32, #tpu.memory_space<vmem>>, %arg17: memref<1x8x32xf32, #tpu.memory_space<vmem>>) attributes {dimension_semantics = [#tpu.dimension_semantics<parallel>, #tpu.dimension_semantics<parallel>, #tpu.dimension_semantics<arbitrary>], iteration_bounds = array<i64: 2, 1, 1>, scalar_prefetch = 0 : i64, scratch_operands = 6 : i64, tpu.core_type = #tpu.core_type<tc>, window_params = [{transform_indices = @transform_0, window_bounds = array<i64: 1, 8, 32>}, {transform_indices = @transform_1, window_bounds = array<i64: 1, 8, 32>}, {pipeline_mode = #tpu.pipeline_mode<synchronous>, transform_indices = @transform_2, window_bounds = array<i64: 32, 32>}, {pipeline_mode = #tpu.pipeline_mode<synchronous>, transform_indices = @transform_3, window_bounds = array<i64: 1, 32>}, {pipeline_mode = #tpu.pipeline_mode<synchronous>, transform_indices = @transform_4, window_bounds = array<i64: 32, 32>}, {pipeline_mode = #tpu.pipeline_mode<synchronous>, transform_indices = @transform_5, window_bounds = array<i64: 1, 32>}, {pipeline_mode = #tpu.pipeline_mode<synchronous>, transform_indices = @transform_6, window_bounds = array<i64: 32, 32>}, {pipeline_mode = #tpu.pipeline_mode<synchronous>, transform_indices = @transform_7, window_bounds = array<i64: 1, 32>}, {transform_indices = @transform_8, window_bounds = array<i64: 1, 8, 32>}]} {
    %c0_i32 = arith.constant 0 : i32
    %0 = arith.cmpi eq, %arg2, %c0_i32 : i32
    %1 = arith.extui %0 : i1 to i32
    %c0_i32_0 = arith.constant 0 : i32
    %2 = arith.cmpi ne, %1, %c0_i32_0 : i32
    scf.if %2 {
      %c0_51 = arith.constant 0 : index
      %c0_52 = arith.constant 0 : index
      %c0_53 = arith.constant 0 : index
      %52 = vector.load %arg3[%c0_51, %c0_52, %c0_53] : memref<1x8x32xf32, #tpu.memory_space<vmem>>, vector<1x8x32xf32>
      %53 = vector.shape_cast %52 : vector<1x8x32xf32> to vector<8x32xf32>
      %54 = arith.truncf %53 : vector<8x32xf32> to vector<8x32xbf16>
      %c0_54 = arith.constant 0 : index
      %c0_55 = arith.constant 0 : index
      %55 = vector.load %arg5[%c0_54, %c0_55] : memref<32x32xbf16, #tpu.memory_space<vmem>>, vector<32x32xbf16>
      %cst_56 = arith.constant dense<0.000000e+00> : vector<8x32xf32>
      %56 = tpu.matmul %54, %55, %cst_56 {dimension_numbers = #tpu.dot_dimension_numbers<[1], [0], [0], [1], [0, 0, 1, 1], [], []>} : vector<8x32xbf16>, vector<32x32xbf16>, vector<8x32xf32> -> vector<8x32xf32>
      %c0_57 = arith.constant 0 : index
      %c0_58 = arith.constant 0 : index
      %57 = vector.load %arg6[%c0_57, %c0_58] : memref<1x32xf32, #tpu.memory_space<vmem>>, vector<1x32xf32>
      %58 = vector.broadcast %57 : vector<1x32xf32> to vector<8x32xf32>
      %59 = arith.addf %56, %58 : vector<8x32xf32>
      %60 = vector.shape_cast %59 : vector<8x32xf32> to vector<1x8x32xf32>
      %61 = arith.truncf %60 : vector<1x8x32xf32> to vector<1x8x32xbf16>
      %c0_59 = arith.constant 0 : index
      %c0_60 = arith.constant 0 : index
      %c0_61 = arith.constant 0 : index
      %62 = vector.load %arg12[%c0_59, %c0_60, %c0_61] : memref<1x8x32xbf16, #tpu.memory_space<vmem>>, vector<1x8x32xbf16>
      tpu.vector_store %arg12[%c0_59, %c0_60, %c0_61], %61 {strides = array<i32>} : memref<1x8x32xbf16, #tpu.memory_space<vmem>>, vector<1x8x32xbf16>,
      %cst_62 = arith.constant 0xFF800000 : f32
      %63 = vector.broadcast %cst_62 : f32 to vector<1x8x1xf32>
      %c0_63 = arith.constant 0 : index
      %c0_64 = arith.constant 0 : index
      %c0_65 = arith.constant 0 : index
      %64 = vector.load %arg15[%c0_63, %c0_64, %c0_65] : memref<1x8x1xf32, #tpu.memory_space<vmem>>, vector<1x8x1xf32>
      tpu.vector_store %arg15[%c0_63, %c0_64, %c0_65], %63 {strides = array<i32>} : memref<1x8x1xf32, #tpu.memory_space<vmem>>, vector<1x8x1xf32>,
      %cst_66 = arith.constant 0.000000e+00 : f32
      %65 = vector.broadcast %cst_66 : f32 to vector<1x8x1xf32>
      %c0_67 = arith.constant 0 : index
      %c0_68 = arith.constant 0 : index
      %c0_69 = arith.constant 0 : index
      %66 = vector.load %arg16[%c0_67, %c0_68, %c0_69] : memref<1x8x1xf32, #tpu.memory_space<vmem>>, vector<1x8x1xf32>
      tpu.vector_store %arg16[%c0_67, %c0_68, %c0_69], %65 {strides = array<i32>} : memref<1x8x1xf32, #tpu.memory_space<vmem>>, vector<1x8x1xf32>,
      %cst_70 = arith.constant 0.000000e+00 : f32
      %67 = vector.broadcast %cst_70 : f32 to vector<1x8x32xf32>
      %c0_71 = arith.constant 0 : index
      %c0_72 = arith.constant 0 : index
      %c0_73 = arith.constant 0 : index
      %68 = vector.load %arg17[%c0_71, %c0_72, %c0_73] : memref<1x8x32xf32, #tpu.memory_space<vmem>>, vector<1x8x32xf32>
      tpu.vector_store %arg17[%c0_71, %c0_72, %c0_73], %67 {strides = array<i32>} : memref<1x8x32xf32, #tpu.memory_space<vmem>>, vector<1x8x32xf32>,
    } else {
    }
    %c0 = arith.constant 0 : index
    %c0_1 = arith.constant 0 : index
    %c0_2 = arith.constant 0 : index
    %3 = vector.load %arg4[%c0, %c0_1, %c0_2] : memref<1x8x32xf32, #tpu.memory_space<vmem>>, vector<1x8x32xf32>
    %4 = vector.shape_cast %3 : vector<1x8x32xf32> to vector<8x32xf32>
    %5 = arith.truncf %4 : vector<8x32xf32> to vector<8x32xbf16>
    %c0_3 = arith.constant 0 : index
    %c0_4 = arith.constant 0 : index
    %6 = vector.load %arg7[%c0_3, %c0_4] : memref<32x32xbf16, #tpu.memory_space<vmem>>, vector<32x32xbf16>
    %cst = arith.constant dense<0.000000e+00> : vector<8x32xf32>
    %7 = tpu.matmul %5, %6, %cst {dimension_numbers = #tpu.dot_dimension_numbers<[1], [0], [0], [1], [0, 0, 1, 1], [], []>} : vector<8x32xbf16>, vector<32x32xbf16>, vector<8x32xf32> -> vector<8x32xf32>
    %c0_5 = arith.constant 0 : index
    %c0_6 = arith.constant 0 : index
    %8 = vector.load %arg9[%c0_5, %c0_6] : memref<32x32xbf16, #tpu.memory_space<vmem>>, vector<32x32xbf16>
    %cst_7 = arith.constant dense<0.000000e+00> : vector<8x32xf32>
    %9 = tpu.matmul %5, %8, %cst_7 {dimension_numbers = #tpu.dot_dimension_numbers<[1], [0], [0], [1], [0, 0, 1, 1], [], []>} : vector<8x32xbf16>, vector<32x32xbf16>, vector<8x32xf32> -> vector<8x32xf32>
    %c0_8 = arith.constant 0 : index
    %c0_9 = arith.constant 0 : index
    %10 = vector.load %arg8[%c0_8, %c0_9] : memref<1x32xf32, #tpu.memory_space<vmem>>, vector<1x32xf32>
    %11 = vector.broadcast %10 : vector<1x32xf32> to vector<8x32xf32>
    %12 = arith.addf %7, %11 : vector<8x32xf32>
    %13 = vector.shape_cast %12 : vector<8x32xf32> to vector<1x8x32xf32>
    %14 = arith.truncf %13 : vector<1x8x32xf32> to vector<1x8x32xbf16>
    %c0_10 = arith.constant 0 : index
    %c0_11 = arith.constant 0 : index
    %15 = vector.load %arg10[%c0_10, %c0_11] : memref<1x32xf32, #tpu.memory_space<vmem>>, vector<1x32xf32>
    %16 = vector.broadcast %15 : vector<1x32xf32> to vector<8x32xf32>
    %17 = arith.addf %9, %16 : vector<8x32xf32>
    %18 = vector.shape_cast %17 : vector<8x32xf32> to vector<1x8x32xf32>
    %19 = arith.truncf %18 : vector<1x8x32xf32> to vector<1x8x32xbf16>
    %c0_12 = arith.constant 0 : index
    %c0_13 = arith.constant 0 : index
    %c0_14 = arith.constant 0 : index
    %20 = vector.load %arg13[%c0_12, %c0_13, %c0_14] : memref<1x8x32xbf16, #tpu.memory_space<vmem>>, vector<1x8x32xbf16>
    tpu.vector_store %arg13[%c0_12, %c0_13, %c0_14], %14 {strides = array<i32>} : memref<1x8x32xbf16, #tpu.memory_space<vmem>>, vector<1x8x32xbf16>,
    %c0_15 = arith.constant 0 : index
    %c0_16 = arith.constant 0 : index
    %c0_17 = arith.constant 0 : index
    %21 = vector.load %arg14[%c0_15, %c0_16, %c0_17] : memref<1x8x32xbf16, #tpu.memory_space<vmem>>, vector<1x8x32xbf16>
    tpu.vector_store %arg14[%c0_15, %c0_16, %c0_17], %19 {strides = array<i32>} : memref<1x8x32xbf16, #tpu.memory_space<vmem>>, vector<1x8x32xbf16>,
    %c0_18 = arith.constant 0 : index
    %c0_19 = arith.constant 0 : index
    %c0_20 = arith.constant 0 : index
    %22 = vector.load %arg13[%c0_18, %c0_19, %c0_20] : memref<1x8x32xbf16, #tpu.memory_space<vmem>>, vector<1x8x32xbf16>
    %c0_21 = arith.constant 0 : index
    %c0_22 = arith.constant 0 : index
    %c0_23 = arith.constant 0 : index
    %23 = vector.load %arg14[%c0_21, %c0_22, %c0_23] : memref<1x8x32xbf16, #tpu.memory_space<vmem>>, vector<1x8x32xbf16>
    %c0_24 = arith.constant 0 : index
    %c0_25 = arith.constant 0 : index
    %c0_26 = arith.constant 0 : index
    %24 = vector.load %arg12[%c0_24, %c0_25, %c0_26] : memref<1x8x32xbf16, #tpu.memory_space<vmem>>, vector<1x8x32xbf16>
    %cst_27 = arith.constant dense<0.000000e+00> : vector<1x8x8xf32>
    %25 = tpu.matmul %24, %22, %cst_27 {dimension_numbers = #tpu.dot_dimension_numbers<[2], [2], [1], [1], [0, 0, 0, 1, 1, 1], [0], [0]>} : vector<1x8x32xbf16>, vector<1x8x32xbf16>, vector<1x8x8xf32> -> vector<1x8x8xf32>
    %c0_28 = arith.constant 0 : index
    %c0_29 = arith.constant 0 : index
    %c0_30 = arith.constant 0 : index
    %26 = vector.load %arg15[%c0_28, %c0_29, %c0_30] : memref<1x8x1xf32, #tpu.memory_space<vmem>>, vector<1x8x1xf32>
    %cst_31 = arith.constant dense<0xFF800000> : vector<1x8xf32>
    %27 = vector.multi_reduction <maximumf>, %25, %cst_31 [2] : vector<1x8x8xf32> to vector<1x8xf32>
    %28 = vector.shape_cast %27 : vector<1x8xf32> to vector<1x8x1xf32>
    %29 = arith.maximumf %26, %28 : vector<1x8x1xf32>
    %30 = arith.subf %26, %29 : vector<1x8x1xf32>
    %31 = math.exp %30 : vector<1x8x1xf32>
    %32 = vector.broadcast %29 : vector<1x8x1xf32> to vector<1x8x8xf32>
    %33 = arith.subf %25, %32 : vector<1x8x8xf32>
    %34 = math.exp %33 : vector<1x8x8xf32>
    %c0_32 = arith.constant 0 : index
    %c0_33 = arith.constant 0 : index
    %c0_34 = arith.constant 0 : index
    %35 = vector.load %arg16[%c0_32, %c0_33, %c0_34] : memref<1x8x1xf32, #tpu.memory_space<vmem>>, vector<1x8x1xf32>
    %36 = arith.mulf %31, %35 : vector<1x8x1xf32>
    %cst_35 = arith.constant dense<0.000000e+00> : vector<1x8xf32>
    %37 = vector.multi_reduction <add>, %34, %cst_35 [2] : vector<1x8x8xf32> to vector<1x8xf32>
    %38 = vector.shape_cast %37 : vector<1x8xf32> to vector<1x8x1xf32>
    %39 = arith.addf %36, %38 : vector<1x8x1xf32>
    %c0_36 = arith.constant 0 : index
    %c0_37 = arith.constant 0 : index
    %c0_38 = arith.constant 0 : index
    %40 = vector.load %arg16[%c0_36, %c0_37, %c0_38] : memref<1x8x1xf32, #tpu.memory_space<vmem>>, vector<1x8x1xf32>
    tpu.vector_store %arg16[%c0_36, %c0_37, %c0_38], %39 {strides = array<i32>} : memref<1x8x1xf32, #tpu.memory_space<vmem>>, vector<1x8x1xf32>,
    %41 = arith.truncf %34 : vector<1x8x8xf32> to vector<1x8x8xbf16>
    %cst_39 = arith.constant dense<0.000000e+00> : vector<1x8x32xf32>
    %42 = tpu.matmul %41, %23, %cst_39 {dimension_numbers = #tpu.dot_dimension_numbers<[2], [1], [1], [2], [0, 0, 0, 1, 1, 2], [0], [0]>} : vector<1x8x8xbf16>, vector<1x8x32xbf16>, vector<1x8x32xf32> -> vector<1x8x32xf32>
    %c0_40 = arith.constant 0 : index
    %c0_41 = arith.constant 0 : index
    %c0_42 = arith.constant 0 : index
    %43 = vector.load %arg17[%c0_40, %c0_41, %c0_42] : memref<1x8x32xf32, #tpu.memory_space<vmem>>, vector<1x8x32xf32>
    %44 = vector.broadcast %31 : vector<1x8x1xf32> to vector<1x8x32xf32>
    %45 = arith.mulf %44, %43 : vector<1x8x32xf32>
    %46 = arith.addf %45, %42 : vector<1x8x32xf32>
    %c0_43 = arith.constant 0 : index
    %c0_44 = arith.constant 0 : index
    %c0_45 = arith.constant 0 : index
    %47 = vector.load %arg17[%c0_43, %c0_44, %c0_45] : memref<1x8x32xf32, #tpu.memory_space<vmem>>, vector<1x8x32xf32>
    tpu.vector_store %arg17[%c0_43, %c0_44, %c0_45], %46 {strides = array<i32>} : memref<1x8x32xf32, #tpu.memory_space<vmem>>, vector<1x8x32xf32>,
    %c0_46 = arith.constant 0 : index
    %c0_47 = arith.constant 0 : index
    %c0_48 = arith.constant 0 : index
    %48 = vector.load %arg15[%c0_46, %c0_47, %c0_48] : memref<1x8x1xf32, #tpu.memory_space<vmem>>, vector<1x8x1xf32>
    tpu.vector_store %arg15[%c0_46, %c0_47, %c0_48], %29 {strides = array<i32>} : memref<1x8x1xf32, #tpu.memory_space<vmem>>, vector<1x8x1xf32>,
    %c0_i32_49 = arith.constant 0 : i32
    %49 = arith.cmpi eq, %arg2, %c0_i32_49 : i32
    %50 = arith.extui %49 : i1 to i32
    %c0_i32_50 = arith.constant 0 : i32
    %51 = arith.cmpi ne, %50, %c0_i32_50 : i32
    scf.if %51 {
      %c0_51 = arith.constant 0 : index
      %c0_52 = arith.constant 0 : index
      %c0_53 = arith.constant 0 : index
      %52 = vector.load %arg16[%c0_51, %c0_52, %c0_53] : memref<1x8x1xf32, #tpu.memory_space<vmem>>, vector<1x8x1xf32>
      %53 = tpu.reciprocal %52 {approx = true} : vector<1x8x1xf32> -> vector<1x8x1xf32>
      %c0_54 = arith.constant 0 : index
      %c0_55 = arith.constant 0 : index
      %c0_56 = arith.constant 0 : index
      %54 = vector.load %arg17[%c0_54, %c0_55, %c0_56] : memref<1x8x32xf32, #tpu.memory_space<vmem>>, vector<1x8x32xf32>
      %55 = vector.broadcast %53 : vector<1x8x1xf32> to vector<1x8x32xf32>
      %56 = arith.mulf %54, %55 : vector<1x8x32xf32>
      %c0_57 = arith.constant 0 : index
      %c0_58 = arith.constant 0 : index
      %c0_59 = arith.constant 0 : index
      %57 = vector.load %arg11[%c0_57, %c0_58, %c0_59] : memref<1x8x32xf32, #tpu.memory_space<vmem>>, vector<1x8x32xf32>
      tpu.vector_store %arg11[%c0_57, %c0_58, %c0_59], %56 {strides = array<i32>} : memref<1x8x32xf32, #tpu.memory_space<vmem>>, vector<1x8x32xf32>,
    } else {
    }
    return
  }
  func.func @transform_0(%arg0: i32, %arg1: i32, %arg2: i32) -> (i32, i32, i32) {
    %c0_i32 = arith.constant 0 : i32
    %c0_i32_0 = arith.constant 0 : i32
    return %arg0, %arg1, %c0_i32 : i32, i32, i32
  }
  func.func @transform_1(%arg0: i32, %arg1: i32, %arg2: i32) -> (i32, i32, i32) {
    %c0_i32 = arith.constant 0 : i32
    %c0_i32_0 = arith.constant 0 : i32
    return %arg0, %arg2, %c0_i32 : i32, i32, i32
  }
  func.func @transform_2(%arg0: i32, %arg1: i32, %arg2: i32) -> (i32, i32) {
    %c0_i32 = arith.constant 0 : i32
    %c0_i32_0 = arith.constant 0 : i32
    %c0_i32_1 = arith.constant 0 : i32
    return %c0_i32, %c0_i32_0 : i32, i32
  }
  func.func @transform_3(%arg0: i32, %arg1: i32, %arg2: i32) -> (i32, i32) {
    %c0_i32 = arith.constant 0 : i32
    %c0_i32_0 = arith.constant 0 : i32
    %c0_i32_1 = arith.constant 0 : i32
    return %c0_i32, %c0_i32_0 : i32, i32
  }
  func.func @transform_4(%arg0: i32, %arg1: i32, %arg2: i32) -> (i32, i32) {
    %c0_i32 = arith.constant 0 : i32
    %c0_i32_0 = arith.constant 0 : i32
    %c0_i32_1 = arith.constant 0 : i32
    return %c0_i32, %c0_i32_0 : i32, i32
  }
  func.func @transform_5(%arg0: i32, %arg1: i32, %arg2: i32) -> (i32, i32) {
    %c0_i32 = arith.constant 0 : i32
    %c0_i32_0 = arith.constant 0 : i32
    %c0_i32_1 = arith.constant 0 : i32
    return %c0_i32, %c0_i32_0 : i32, i32
  }
  func.func @transform_6(%arg0: i32, %arg1: i32, %arg2: i32) -> (i32, i32) {
    %c0_i32 = arith.constant 0 : i32
    %c0_i32_0 = arith.constant 0 : i32
    %c0_i32_1 = arith.constant 0 : i32
    return %c0_i32, %c0_i32_0 : i32, i32
  }
  func.func @transform_7(%arg0: i32, %arg1: i32, %arg2: i32) -> (i32, i32) {
    %c0_i32 = arith.constant 0 : i32
    %c0_i32_0 = arith.constant 0 : i32
    %c0_i32_1 = arith.constant 0 : i32
    return %c0_i32, %c0_i32_0 : i32, i32
  }
  func.func @transform_8(%arg0: i32, %arg1: i32, %arg2: i32) -> (i32, i32, i32) {
    %c0_i32 = arith.constant 0 : i32
    %c0_i32_0 = arith.constant 0 : i32
    return %arg0, %arg1, %c0_i32 : i32, i32, i32
  }
}

</mosaic_0001>

<bundles_post_ra>
// kernel: tpu_custom_call.1
= control target key start
LH: loop header
LB: loop body
LE: loop exit
PB: predicated region body
PF: predicated region fallthrough
CT: control target
= control target key end

     0   :  { %s1484_s0 = inlined_call_operand.hbm [shape: f32[2,8,32], index: 0, kind: input, shape index: {}]   ;;  %s1485_s1 = inlined_call_operand.hbm [shape: f32[2,8,32], index: 1, kind: input, shape index: {}]   ;;  %s1486_s2 = inlined_call_operand.hbm [shape: bf16[32,32], index: 2, kind: input, shape index: {}]   ;;  %s1487_s3 = inlined_call_operand.vmem [shape: f32[1,32], index: 3, kind: input, shape index: {}]   ;;  %s1488_s4 = inlined_call_operand.hbm [shape: bf16[32,32], index: 4, kind: input, shape index: {}]   ;;  %s1489_s5 = inlined_call_operand.vmem [shape: f32[1,32], index: 5, kind: input, shape index: {}]   ;;  %s1490_s6 = inlined_call_operand.hbm [shape: bf16[32,32], index: 6, kind: input, shape index: {}]   ;;  %s1491_s7 = inlined_call_operand.vmem [shape: f32[1,32], index: 7, kind: input, shape index: {}]   ;;  %s1492_s8 = inlined_call_operand.hbm [shape: f32[2,8,32], index: 8, kind: output, shape index: {}]  }
   0x1   :  { %1498 = sst [smem:[#allocation29_spill]] %s1486_s2 }
   0x2   :  { %1499 = sst [smem:[#allocation30_spill]] %s1488_s4 }
   0x3   :  { %1500 = sst [smem:[#allocation31_spill]] %s1490_s6 }
   0x4   :  { %13 = vsyncpa [#allocation9], 0 }
   0x5   :  { %15 = vsyncpa [#allocation9 + $0x1], 0 }
   0x6   :  { %16 = vsyncpa [#allocation12], 0 }
   0x7   :  { %18 = vsyncpa [#allocation12 + $0x1], 0 }
   0x8   :  { %19 = vsyncpa [#allocation15], 0 }
   0x9   :  { %20 = vsyncpa [#allocation10], 0 }
   0xa   :  { %22 = vsyncpa [#allocation10 + $0x1], 0  ;;  %s1280_s27 = smov 0   ;;  %s1282_s28 = smov 0  }
   0xb   :  { %s1284_s29 = smov 0   ;;  %s1286_s30 = smov 0  }
   0xc   :  { %s1288_s9 = smov 0   ;;  %s1290_s10 = smov 0  }
   0xd LB: > { %1501 = sst [smem:[#allocation23_spill]] %s1205_s27  ;;  %s1311_s11 = sadd.s32 4294967295, %s1225_s10   ;;  %s1225_s10 = sphi %s1290_s10, %s28_s10   ;;  %s1221_s9 = sphi %s1288_s9, %s1521_s9   ;;  %s1217_s30 = sphi %s1286_s30, %s1520_s30   ;;  %s1213_s29 = sphi %s1284_s29, %s1519_s29   ;;  %s1209_s28 = sphi %s1282_s28, %s1523_s28   ;;  %s1205_s27 = sphi %s1280_s27, %s1522_s27  }
   0xe   : > { %1502 = sst [smem:[#allocation24_spill]] %s1213_s29  ;;  %p811_p0 = scmp.ge.s32.totalorder %s1225_s10, 1 }
   0xf   : > { %1503 = sst [smem:[#allocation25_spill]] %s1221_s9  ;;  %p70_p1 = scmp.eq.s32.totalorder %s1311_s11, 0 }
  0x10   : > { %p262_p2 = scmp.lt.s32.totalorder %s1225_s10, 3  ;;  %s1504_s2 = sld [smem:[#allocation29_spill]] }
  0x11   : > { %s1227_s16 = smov [#allocation13]   ;;  %p815_p6 = scmp.ge.s32.totalorder %s1225_s10, 2 }
  0x12   : > { %p1319_p3 = pnand %p811_p0, %p262_p2  ;;  %s275_s17 = sshll.u32 %s1227_s16, 4  ;;  %s276_s17 = int_to_ptr.vmem [resolvable:$true] %s275_s17 }
  0x13   : > { %s1507_s4 = sld [smem:[#allocation30_spill]]  ;;  %s1228_s22 = smov 64  }
  0x14   : > { %p884_p4 = pneg %p1319_p3  ;;  %s1229_s23 = smov 4  }
  0x15   : > { %s1230_s24 = smov [#allocation14]   ;;  %s1508_s6 = sld [smem:[#allocation31_spill]] }
  0x16   : > { %s273_s14 = sshll.u32 %s1504_s2, 4  ;;  %p1327_p5 = pnand %p884_p4, %p70_p1  ;;  %s274_s14 = int_to_ptr.hbm [resolvable:$true] %s273_s14 }
  0x17   : > { %s292_s25 = sshll.u32 %s1230_s24, 4  ;;  %s1231_s16 = smov [#allocation16]   ;;  %s293_s25 = int_to_ptr.vmem [resolvable:$true] %s292_s25 }
  0x18   : > { %887 = dma.hbm_to_vmem [thread:$0]  (!%p1327_p5), %s274_s14, 256, %s276_s17, [#allocation12], %s1228_s22, %s1228_s22, %s1229_s23  }
  0x19   : > { %s290_s21 = sshll.u32 %s1507_s4, 4  ;;  %s309_s19 = sshll.u32 %s1231_s16, 4  ;;  %s291_s21 = int_to_ptr.hbm [resolvable:$true] %s290_s21  ;;  %s310_s19 = int_to_ptr.vmem [resolvable:$true] %s309_s19 }
  0x1a   : > { %890 = dma.hbm_to_vmem [thread:$0]  (!%p1327_p5), %s291_s21, 256, %s293_s25, [#allocation15], %s1228_s22, %s1228_s22, %s1229_s23  }
  0x1b   : > { %s307_s13 = sshll.u32 %s1508_s6, 4  ;;  %s810_s14 = sadd.s32 4294967294, %s1225_s10   ;;  %s308_s13 = int_to_ptr.hbm [resolvable:$true] %s307_s13 }
  0x1c   : > { %893 = dma.hbm_to_vmem [thread:$0]  (!%p1327_p5), %s308_s13, 256, %s310_s19, [#allocation15], %s1228_s22, %s1228_s22, %s1229_s23  }
  0x1d   : > { %s47_s17 = sadd.s32 1, %s1221_s9  ;;  %s56_s20 = sadd.s32 1, %s1213_s29 }
  0x1e   : > { %p49_p7 = scmp.ge.s32.totalorder %s47_s17, 2  ;;  %p63_p8 = scmp.ne.s32.totalorder %s1213_s29, %s1209_s28 }
  0x1f   : > { %p64_p9 = scmp.eq.s32.totalorder %s1225_s10, 0  ;;  %p69_p10 = scmp.ne.s32.totalorder %s1209_s28, %s1205_s27 }
  0x20   : > { %s1525_s17 = smov (%p49_p7, %s47_s17), 0  ;;  %p249_p13 = scmp.eq.s32.totalorder %s1311_s11, 1 }
  0x21   : > { %1509 = sst [smem:[#allocation26_spill]] %s1525_s17  ;;  %p1354_p11 = por %p64_p9, %p63_p8 }
  0x22   : > { %p1360_p12 = por %p70_p1, %p69_p10  ;;  %s51_s22 = ssub.s32 %s1221_s9, %s1525_s17 }
  0x23   : > { %p54_p0 = scmp.eq.s32.totalorder %s51_s22, 0  ;;  %p255_p2 = scmp.eq.s32.totalorder %s810_s14, 1 }
  0x24   : > { %p1367_p4 = por %p249_p13, %p63_p8  ;;  %p908_p5 = scmp.lt.s32.totalorder %s1225_s10, 2 }
  0x25   : > { %s1373_s24 = scalar_select %p54_p0, %s1213_s29, %s56_s20  }
  0x26   : > { %p1375_p7 = por %p255_p2, %p69_p10  ;;  %s326_s26 = sand.u32 1, %s1213_s29  }
  0x27   : > { %1513 = sst [smem:[#allocation27_spill]] %s1373_s24  ;;  %s816_s12 = sshll.u32 %s326_s26, 3 }
  0x28   : > { %s1514_s25 = scalar_select %p1375_p7, 1, 0 }
  0x29   : > { %s817_s13 = sshll.u32 %s1221_s9, 3  ;;  %s330_s14 = scalar_lea.vmem [#allocation8], %s816_s12 }
  0x2a   : > { %1515 = sst [smem:[#allocation28_spill]] %s1514_s25  ;;  %s335_s22 = scalar_lea.hbm %s1484_s0, %s817_s13 }
  0x2b   : > { %s339_s2 = sshll.u32 %s330_s14, 4  ;;  %s337_s4 = sshll.u32 %s335_s22, 4  ;;  %s340_s2 = int_to_ptr.vmem [resolvable:$true] %s339_s2  ;;  %s338_s4 = int_to_ptr.hbm [resolvable:$true] %s337_s4 }
  0x2c   : > { %p895_p8 = pnand %p908_p5, %p1354_p11  ;;  %s355_s17 = scalar_lea.hbm %s1485_s1, %s817_s13 }
  0x2d   : > { %s346_s24 = sand.u32 1, %s1225_s10   ;;  %s327_s25 = scalar_lea.sflag [#allocation9], %s326_s26 }
  0x2e   : > { %897 = dma.hbm_to_vmem [thread:$0]  (!%p895_p8), %s338_s4, 128, %s340_s2, %s327_s25  }
  0x2f   : > { %s357_s29 = sshll.u32 %s355_s17, 4  ;;  %s350_s9 = scalar_lea.vmem [#allocation11], %s816_s12  ;;  %s358_s29 = int_to_ptr.hbm [resolvable:$true] %s357_s29 }
  0x30   : > { %s359_s27 = sshll.u32 %s350_s9, 4  ;;  %s347_s16 = scalar_lea.sflag [#allocation12], %s346_s24  ;;  %s360_s27 = int_to_ptr.vmem [resolvable:$true] %s359_s27 }
  0x31   : > { %900 = dma.hbm_to_vmem [thread:$0]  (!%p895_p8), %s358_s29, 128, %s360_s27, %s347_s16  }
  0x32   : > { %368 = sbr.rel (%p1319_p3) target bundleno = 825 (0x339), region = 52  ;;  %s1393_s21 = sand.u32 (!%p1319_p3), 1, %s1209_s28  }
  0x33   : > { %s1396_s6 = sshll.u32 (!%p1319_p3), %s1393_s21, 3  ;;  %s371_s2 = scalar_lea.sflag (!%p1319_p3), [#allocation9], %s1393_s21 }
  0x34   : > { %s374_s4 = scalar_lea.vmem (!%p1319_p3), [#allocation8], %s1396_s6 }
  0x37   : > { %1184 = dma.done.wait (%p1360_p12), %s371_s2, 128  }
  0x38   : > { %1186 = vsyncadd (%p1360_p12), %s371_s2, 4294967168  ;;  %s380_s27 = sand.u32 1, %s1311_s11   ;;  %s384_s9 = scalar_lea.vmem [#allocation11], %s1396_s6 }
  0x39   : > { %s381_s29 = scalar_lea.sflag [#allocation12], %s380_s27 }
  0x3a   : > { %1188 = dma.done.wait (%p1360_p12), %s381_s29, 128  }
  0x3b   : > { %1190 = vsyncadd (%p1360_p12), %s381_s29, 4294967168 }
  0x3c   : > { %1192 = dma.done.wait (%p70_p1), [#allocation12], 256  }
  0x3d   : > { %1194 = vsyncadd (%p70_p1), [#allocation12], 4294967040 }
  0x3e   : > { %1196 = dma.done.wait (%p70_p1), [#allocation15], 512  }
  0x3f   : > { %1198 = vsyncadd (%p70_p1), [#allocation15], 4294966784  ;;  %v861_v0 = vld [vmem:[#allocation13 + $0x8] sm:$0xff]  ;;  %v863_v1 = vld [vmem:[#allocation14 + $0x8] sm:$0xff]  ;;  %vm465_vm0 = vcmask 261120   ;;  %vm483_vm1 = vcmask 257024  }
  0x40   : > { %v860_v2 = vld [vmem:[#allocation13] sm:$0xff]  ;;  %v862_v3 = vld [vmem:[#allocation14] sm:$0xff]  ;;  %475 = vmatpush.bf16.msra.mxu0 %v861_v0  ;;  %525 = vmatpush.bf16.msra.mxu1 %v863_v1  ;;  %v972_v8 = vld [vmem:[%s1487_s3] ss:$0 sm:$0xff]  ;;  %vm485_vm2 = vcmask 7168   ;;  %v1232_v22 = vmov -inf  }
  0x41   : > { %v443_v4 = vld [vmem:[%s374_s4] sm:$0xff]  ;;  %v489_v5 = vld [vmem:[%s384_s9] sm:$0xff]  ;;  %486 = vst.msk [vmem:[#allocation5] sm:$0xff] %vm485_vm2, %v1232_v22  ;;  %vm589_vm3 = vcmask 64512   ;;  %v1233_v27 = vmov 0   ;;  %v1234_v28 = vmov 0.0  }
  0x42   : > { %v444_v6 = vpack.c.bf16 %v443_v4, %v443_v4  ;;  %v490_v7 = vpack.c.bf16 %v489_v5, %v489_v5  ;;  %v973_v9 = vld [vmem:[%s1489_s5] ss:$0 sm:$0xff]  ;;  %v865_v21 = vld [vmem:[#allocation16 + $0x8] sm:$0xff]  ;;  %v864_v23 = vld [vmem:[#allocation16] sm:$0xff]  ;;  %969 = vset.pattern.permute.xlu0 %v1233_v27  ;;  %970 = vset.pattern.permute.xlu1 %v1233_v27  ;;  %487 = vst.msk [vmem:[#allocation6] sm:$0xff] %vm485_vm2, %v1234_v28  ;;  %vm617_vm4 = vcmask 1043456  }
  0x43   : > { %555 = vmatpush.bf16.msra.mxu2 %v865_v21  ;;  %971 = vset.pattern.permute.xlu2 %v1233_v27  ;;  %488 = vst.msk [vmem:[#allocation7] sm:$0xff] %vm465_vm0, %v1234_v28  ;;  %v974_v29 = vld [vmem:[%s1491_s7] ss:$0 sm:$0xff]  ;;  %s857_s26 = sshll.u32 %s1217_s30, 3  ;;  %s437_s22 = scalar_lea.vmem [#allocation17], %s1396_s6 }
  0x44   : > { %476 = vmatpush.bf16.msra.mxu0 %v860_v2  ;;  %526 = vmatpush.bf16.msra.mxu1 %v862_v3  ;;  %s669_s19 = scalar_lea.hbm %s1492_s8, %s857_s26  ;;  %s671_s14 = sshll.u32 %s437_s22, 4  ;;  %s672_s14 = int_to_ptr.vmem [resolvable:$true] %s671_s14 }
  0x45   : > { %s673_s20 = sshll.u32 %s669_s19, 4  ;;  %s658_s16 = scalar_lea.sflag [#allocation10], %s1393_s21  ;;  %s674_s20 = int_to_ptr.hbm [resolvable:$true] %s673_s20 }
  0x46   : > { %s1145_s2 = sshra.s32 %s674_s20, 4  ;;  %s1151_s6 = scalar_lea.hbm %s1492_s8, 16  ;;  %s1146_s2 = int_to_ptr.hbm [resolvable:$true] %s1145_s2 }
  0x47   : > { %835 = vmatmul.msk.bf16.vlgmr.msra.gmra.mxu0 %vm465_vm0, %v444_v6  ;;  %844 = vmatmul.msk.bf16.vlgmr.msra.gmra.mxu1 %vm465_vm0, %v490_v7  ;;  %s1147_s4 = scalar_lea.hbm %s1146_s2, 8  ;;  %p1152_p10 = scmp.lt.s32.totalorder %s1146_s2, %s1492_s8 }
  0x48   : > { %556 = vmatpush.bf16.msra.mxu2 %v864_v23  ;;  %v588_v30 = vld [vmem:[#allocation5] sm:$0xff]  ;;  %p1148_p1 = scmp.ne.s32.totalorder %s1146_s2, %s1147_s4  ;;  %p1153_p11 = scmp.lt.s32.totalorder %s1151_s6, %s1147_s4 }
  0x49   : > { %v605_v48 = vld [vmem:[#allocation6] sm:$0xff] }
  0x4a   : > { %v634_v56 = vld [vmem:[#allocation7] sm:$0xff]  ;;  %p1149_p3 = pnand %p1148_p1, %p1367_p4  ;;  %p1154_p12 = por %p1153_p11, %p1152_p10 }
  0x4b   : > { %853 = vmatmul.msk.bf16.vlgmr.msra.gmra.mxu2 %vm465_vm0, %v490_v7 }
  0x4c   : > { %p1150_p9 = pneg %p1149_p3 }
  0x4e   : > { %p1155_p13 = pnand %p1154_p12, %p1150_p9 }
  0xc4   : > { %v478_v10 = vpop.f32.mrf.mxu0  ;;  %v528_v11 = vpop.f32.mrf.mxu1 }
  0xc5   : > { %v479_v12 = vadd.f32 %v972_v8, %v478_v10  ;;  %v529_v13 = vadd.f32 %v973_v9, %v528_v11 }
  0xc7   : > { %v482_v14 = vpack.c.bf16 %v479_v12, %v479_v12  ;;  %v532_v15 = vpack.c.bf16 %v529_v13, %v529_v13 }
  0xc9   : > { %484 = vst.msk [vmem:[#allocation2] sm:$0xf] %vm483_vm1, %v482_v14 }
  0xca   : > { %564 = vst.msk [vmem:[#allocation3] sm:$0xf] %vm483_vm1, %v532_v15 }
  0xcc   : > { %v480_v16 = vpop.f32.mrf.mxu0  ;;  %v530_v17 = vpop.f32.mrf.mxu1 }
  0xce   : > { %v558_v31 = vpop.f32.mrf.mxu2 }
  0xcf   : > { %v559_v33 = vadd.f32 %v974_v29, %v558_v31 }
  0xd0   : > { %v568_v20 = vld [vmem:[#allocation2] sm:$0xf] }
  0xd1   : > { %v566_v18 = vld [vmem:[#allocation3] sm:$0xf]  ;;  %v562_v35 = vpack.c.bf16 %v559_v33, %v559_v33 }
  0xd2   : > { %v573_v19 = vsel %vm465_vm0, %v566_v18, 0 }
  0xd3   : > { %582 = vmatpush.bf16.xpose.msra.mxu3 %v573_v19  ;;  %565 = vst.msk [vmem:[#allocation4] sm:$0xf] %vm483_vm1, %v562_v35 }
  0xd6   : > { %v560_v37 = vpop.f32.mrf.mxu2 }
  0xda   : > { %854 = vmatmul.msk.bf16.vlgmr.msra.gmra.mxu3 %vm465_vm0, %v568_v20  ;;  %v567_v38 = vld [vmem:[#allocation4] sm:$0xf] }
  0xdb   : > { %v619_v39 = vsel %vm617_vm4, %v567_v38, 0 }
  0xdc   : > { %628 = vmatpush.bf16.msrb.mxu0 %v619_v39 }
 0x15d   : > { %v584_v24 = vpop.f32.mrf.mxu3 }
 0x15e   : > { %v590_v25 = vsel %vm589_vm3, %v584_v24, -inf }
 0x15f   : > { %591 = vmax.xlane.f32.xlu0 %v590_v25 }
 0x165   : > { %v586_v26 = vpop.f32.mrf.mxu3 }
 0x1d2   : > { %v592_v32 = vpop.xlane.xlu0 %591 }
 0x1d3   : > { %v593_v34 = vmax.f32 %v588_v30, %v592_v32 }
 0x1d5   : > { %v594_v36 = vsub.f32 %v588_v30, %v593_v34  ;;  %643 = vst.msk [vmem:[#allocation5] sm:$0xff] %vm485_vm2, %v593_v34  ;;  %599 = vperm.xlu0 %969, %v593_v34  }
 0x1d7   : > { %v595_v46 = vmul.f32 1.442695, %v594_v36 }
 0x247   : > { %v600_v40 = vpop.permute.xlu0 %599 }
 0x248   : > { %v602_v41 = vsub.f32 %v584_v24, %v600_v40 }
 0x24a   : > { %v603_v42 = vmul.f32 1.442695, %v602_v41 }
 0x24c   : > { %975 = vpow2.f32 %v603_v42 }
 0x24d   : > { %977 = vpow2.f32 %v595_v46 }
 0x252   : > { %v976_v43 = vpop.eup %975 }
 0x253   : > { %v607_v44 = vsel %vm589_vm3, %v976_v43, 0.0  ;;  %v613_v45 = vpack.c.bf16 %v976_v43, %v976_v43  ;;  %v978_v47 = vpop.eup %977 }
 0x254   : > { %608 = vadd.xlane.f32.xlu1 %v607_v44  ;;  %v606_v49 = vmul.f32 %v978_v47, %v605_v48 }
 0x255   : > { %855 = vmatmul.msk.bf16.vlgmr.msrb.gmra.mxu0 %vm589_vm3, %v613_v45 }
 0x26d   : > { %637 = vperm.xlu1 %970, %v978_v47  }
 0x2c7   : > { %v609_v50 = vpop.xlane.xlu1 %608 }
 0x2c8   : > { %v610_v51 = vadd.f32 %v609_v50, %v606_v49 }
 0x2ca   : > { %612 = vst.msk [vmem:[#allocation6] sm:$0xff] %vm485_vm2, %v610_v51 }
 0x2d1   : > { %v647_v52 = vld [vmem:[#allocation6] sm:$0xff] }
 0x2d2   : > { %v630_v53 = vpop.f32.mrf.mxu0  ;;  %979 = vrcp.f32 %v647_v52 }
 0x2d8   : > { %v980_v54 = vpop.eup %979 }
 0x2d9   : > { %652 = vperm.xlu2 %971, %v980_v54  }
 0x2da   : > { %v632_v55 = vpop.f32.mrf.mxu0 }
 0x2df   : > { %v638_v57 = vpop.permute.xlu1 %637 }
 0x2e0   : > { %v640_v58 = vmul.f32 %v638_v57, %v634_v56 }
 0x2e2   : > { %v641_v59 = vadd.f32 %v640_v58, %v630_v53 }
 0x2e4   : > { %642 = vst.msk [vmem:[#allocation7] sm:$0xff] %vm465_vm0, %v641_v59 }
 0x2eb   : > { %v649_v60 = vld [vmem:[#allocation7] sm:$0xff] }
 0x333   : > { %v653_v61 = vpop.permute.xlu2 %652 }
 0x334   : > { %v655_v62 = vmul.f32 %v653_v61, %v649_v60 }
 0x336   : > { %656 = vst.msk [vmem:[%s437_s22] sm:$0xff] %vm465_vm0, %v655_v62 }
 0x337   : > { %1158 = shalt.err (!%p1155_p13)
}
 0x338   : > { %882 = dma.vmem_to_hbm [thread:$0]  (%p1367_p4), %s672_s14, 128, %s674_s20, %s658_s16  }
 0x339 PF: > { %s1516_s21 = sld [smem:[#allocation23_spill]]  ;;  %p902_p0 = pnand %p815_p6, %p1375_p7 }
 0x33b   : > { %p903_p2 = pneg %p902_p0 }
 0x33f   : > { %s685_s11 = sand.u32 1, %s1516_s21  }
 0x340   : > { %s686_s17 = scalar_lea.sflag [#allocation10], %s685_s11 }
 0x341   : > { %1200 = dma.done.wait (%p903_p2), %s686_s17, 128  }
 0x342   : > { %1202 = vsyncadd (%p903_p2), %s686_s17, 4294967168  ;;  %s28_s10 = sadd.s32 1, %s1225_s10   ;;  %s1518_s18 = sld [smem:[#allocation24_spill]] }
 0x343   : > { %p25_p5 = scmp.ge.s32.totalorder %s28_s10, 4   ;;  %s1519_s29 = sld [smem:[#allocation27_spill]] }
 0x344   : > { %s1520_s30 = sld [smem:[#allocation25_spill]]  ;;  %s1522_s27 = smov %s1209_s28 }
 0x345   : > { %s1521_s9 = sld [smem:[#allocation26_spill]]  ;;  %27 = sbr.rel (!%p25_p5) target bundleno = 13 (0xd), region = 130 }
 0x348   : > { %s1523_s28 = smov %s1518_s18 }
 0x34a   :  { %692 = vsyncpa [#allocation9], 1 }
 0x34b   :  { %694 = vsyncpa [#allocation9 + $0x1], 1 }
 0x34c   :  { %695 = vsyncpa [#allocation12], 1 }
 0x34d   :  { %697 = vsyncpa [#allocation12 + $0x1], 1 }
 0x34e   :  { %698 = vsyncpa [#allocation15], 1 }
 0x34f   :  { %699 = vsyncpa [#allocation10], 1 }
 0x350   :  { %701 = vsyncpa [#allocation10 + $0x1], 1 }

</bundles_post_ra>
